<compile_context>
chip_gen: v5e
topology: v5e:2x2
jax: 0.10.0
libtpu: 0.0.40
codegen_flags: <defaults>
</compile_context>

<pallas_src>
import functools

import jax
import jax.numpy as jnp
from jax.experimental import pallas as pl
from jax.experimental.pallas import tpu as pltpu


_TARGET_BLOCK_BYTES = 2 * 1024 * 1024   # ~2 MiB input tiles: ~85%+ of HBM roofline
_VMEM_LIMIT_BYTES = 32 * 1024 * 1024    # raise v5e's 16 MiB scoped default


# ----------------------------------------------------------------- tiling ---
def _round_up(x, m):
    return ((x + m - 1) // m) * m


def _sublane_granularity(itemsize):
    # 8 rows per vreg sublane tile for 4-byte dtypes, 16 for bf16, 32 for int8.
    return 8 * max(1, 4 // max(1, itemsize))


def _pick_ht(h, w, itemsize):
    """Rows per H tile: biggest multiple-of-granularity tile under the budget."""
    gran = _sublane_granularity(itemsize)
    full = _round_up(h, gran)
    if full * w * itemsize <= _TARGET_BLOCK_BYTES:
        return full                                  # whole [H, W] slab per block
    ht = (_TARGET_BLOCK_BYTES // max(1, w * itemsize)) // gran * gran
    return int(max(gran, min(ht, full)))


def _plan(x, ht):
    b, c, h, w = x.shape
    assert h >= 2 and w >= 2, "GradientXOY needs at least a 2x2 spatial extent"
    itemsize = jnp.dtype(x.dtype).itemsize
    gran = _sublane_granularity(itemsize)
    if ht is None:
        ht = _pick_ht(h, w, itemsize)
    ht = int(max(gran, _round_up(min(ht, _round_up(h, gran)), gran)))
    return b, c, h, w, b * c, ht, gran, itemsize


def _specs(h, w, ht, hb):
    """BlockSpecs over the flattened (N, H, W) view for grid (N, num_h_tiles)."""
    n_ht = pl.cdiv(h, ht)              # input / grad_x tiles along H
    n_halo = pl.cdiv(h, hb)            # hb-row halo blocks along H
    n_gy = pl.cdiv(h - 1, ht)          # grad_y tiles along H (can be n_ht - 1)
    step = ht // hb                    # halo blocks per H tile (ht % hb == 0)

    x_spec = pl.BlockSpec((1, ht, w), lambda i, t: (i, t, 0))
    # First row of tile t+1, fetched as one hb-row block of the same array
    # (clamped on the last tile, where its value is masked out anyway).
    halo_spec = pl.BlockSpec(
        (1, hb, w),
        lambda i, t: (i, jnp.minimum((t + 1) * step, n_halo - 1), 0))
    # Clamp so a tile that has no grad_y rows (possible when H % ht == 1)
    # maps to a valid block; the kernel skips its store in that case, so the
    # resident output block is left intact.
    gy_spec = pl.BlockSpec(
        (1, ht, w), lambda i, t: (i, jnp.minimum(t, n_gy - 1), 0))
    gx_spec = pl.BlockSpec((1, ht, w - 1), lambda i, t: (i, t, 0))
    return n_ht, x_spec, halo_spec, gy_spec, gx_spec


def _compiler_params():
    return pltpu.CompilerParams(
        dimension_semantics=("parallel", "arbitrary"),
        vmem_limit_bytes=_VMEM_LIMIT_BYTES)


# ---------------------------------------------------------------- kernels ---
def _fused_kernel(x_ref, halo_ref, gy_ref, gx_ref, *, ht, h):
    t = pl.program_id(1)
    x = x_ref[0]                                   # (ht, W) input tile
    # grad_x: forward difference along W (lane axis), fully local to the tile.
    gx_ref[0] = x[:, 1:] - x[:, :-1]
    # grad_y: forward difference along H (sublane axis).  Rows 0..ht-2 come
    # from inside the tile; the tile's last row needs the first row of the
    # next tile, provided by the halo block.  Tiles whose first grad_y row is
    # already past the end of grad_y (H % ht == 1 corner) skip the store so
    # the clamped, resident output block is not clobbered.
    @pl.when(t * ht < h - 1)
    def _():
        gy_ref[0, : ht - 1, :] = x[1:, :] - x[: ht - 1, :]
        gy_ref[0, ht - 1:, :] = halo_ref[0, 0:1, :] - x[ht - 1:, :]


def _grad_y_kernel(x_ref, halo_ref, gy_ref, *, ht, h):
    t = pl.program_id(1)
    x = x_ref[0]
    @pl.when(t * ht < h - 1)
    def _():
        gy_ref[0, : ht - 1, :] = x[1:, :] - x[: ht - 1, :]
        gy_ref[0, ht - 1:, :] = halo_ref[0, 0:1, :] - x[ht - 1:, :]


def _grad_x_kernel(x_ref, gx_ref):
    x = x_ref[0]
    gx_ref[0] = x[:, 1:] - x[:, :-1]


# --------------------------------------------------------------- wrappers ---
def gradient_xoy(x, *, ht=None):
    """GradientXOY.forward(tensor): fused single-pass [grad_y, grad_x]."""
    b, c, h, w, n, ht, gran, itemsize = _plan(x, ht)
    x3 = x.reshape(n, h, w)
    n_ht, x_spec, halo_spec, gy_spec, gx_spec = _specs(h, w, ht, gran)
    cost = pl.CostEstimate(
        flops=2 * n * h * w, transcendentals=0,
        bytes_accessed=itemsize * n * (h * w + (h - 1) * w + h * (w - 1)))
    gy, gx = pl.pallas_call(
        functools.partial(_fused_kernel, ht=ht, h=h),
        out_shape=(jax.ShapeDtypeStruct((n, h - 1, w), x.dtype),
                   jax.ShapeDtypeStruct((n, h, w - 1), x.dtype)),
        grid_spec=pltpu.PrefetchScalarGridSpec(
            num_scalar_prefetch=0,
            grid=(n, n_ht),
            in_specs=[x_spec, halo_spec],
            out_specs=[gy_spec, gx_spec]),
        compiler_params=_compiler_params(),
        cost_estimate=cost,
    )(x3, x3)            # same array twice: ht-row tiles + tiny halo view
    return [gy.reshape(b, c, h - 1, w), gx.reshape(b, c, h, w - 1)]


def gradient_y(x, *, ht=None):
    """GradientY(pad=False): out[..., y, x] = in[..., y+1, x] - in[..., y, x]."""
    b, c, h, w, n, ht, gran, itemsize = _plan(x, ht)
    x3 = x.reshape(n, h, w)
    n_ht, x_spec, halo_spec, gy_spec, _ = _specs(h, w, ht, gran)
    cost = pl.CostEstimate(
        flops=n * (h - 1) * w, transcendentals=0,
        bytes_accessed=itemsize * n * (h * w + (h - 1) * w))
    gy = pl.pallas_call(
        functools.partial(_grad_y_kernel, ht=ht, h=h),
        out_shape=jax.ShapeDtypeStruct((n, h - 1, w), x.dtype),
        grid_spec=pltpu.PrefetchScalarGridSpec(
            num_scalar_prefetch=0,
            grid=(n, n_ht),
            in_specs=[x_spec, halo_spec],
            out_specs=gy_spec),
        compiler_params=_compiler_params(),
        cost_estimate=cost,
    )(x3, x3)
    return gy.reshape(b, c, h - 1, w)


def gradient_x(x, *, ht=None):
    """GradientX(pad=False): out[..., y, x] = in[..., y, x+1] - in[..., y, x]."""
    b, c, h, w, n, ht, gran, itemsize = _plan(x, ht)
    x3 = x.reshape(n, h, w)
    n_ht, x_spec, _, _, gx_spec = _specs(h, w, ht, gran)
    cost = pl.CostEstimate(
        flops=n * h * (w - 1), transcendentals=0,
        bytes_accessed=itemsize * n * (h * w + h * (w - 1)))
    gx = pl.pallas_call(
        _grad_x_kernel,
        out_shape=jax.ShapeDtypeStruct((n, h, w - 1), x.dtype),
        grid_spec=pltpu.PrefetchScalarGridSpec(
            num_scalar_prefetch=0,
            grid=(n, n_ht),
            in_specs=[x_spec],
            out_specs=gx_spec),
        compiler_params=_compiler_params(),
        cost_estimate=cost,
    )(x3)
    return gx.reshape(b, c, h, w - 1)


def gradient_xoy_forward(inputs, *, ht=None):
    """Mirrors GradientXOY.forward().

    For a single tensor the fused kernel is used (x read from HBM once, both
    gradients written); the tuple form applies grad_y / grad_x to two tensors.
    """
    if isinstance(inputs, (list, tuple)):
        assert len(inputs) == 2
        return (gradient_y(inputs[0], ht=ht), gradient_x(inputs[1], ht=ht))
    return gradient_xoy(inputs, ht=ht)


# -------------------------------------------------------------- reference ---
def gradient_xoy_ref(x):
    gy = x[:, :, 1:, :] - x[:, :, :-1, :]
    gx = x[:, :, :, 1:] - x[:, :, :, :-1]
    return [gy, gx]


def _check(name, got, want, atol=1e-6):
    got = jax.block_until_ready(got)
    assert got.shape == want.shape, (name, got.shape, want.shape)
    err = float(jnp.max(jnp.abs(got - want)))
    assert err <= atol, f"{name}: max abs err = {err}"


# ------------------------------------------------------------------- main ---
if __name__ == "__main__":
    k0, k1, k2 = jax.random.split(jax.random.PRNGKey(0), 3)

    # 1) Demo shape from the module (single H tile per block).
    B, C, H, W = 2, 4, 16, 16
    x = jax.random.normal(k0, (B, C, H, W), jnp.float32)
    gy_ref, gx_ref = gradient_xoy_ref(x)

    gy, gx = gradient_xoy_forward(x)            # fused single-tensor path
    _check("fused grad_y", gy, gy_ref)
    _check("fused grad_x", gx, gx_ref)

    ty, tx = gradient_xoy_forward((x, x))       # tuple path
    _check("tuple grad_y", ty, gy_ref)
    _check("tuple grad_x", tx, gx_ref)

    # 2) Multi-tile path (H split into 16-row tiles + halo), lane-dense W.
    x2 = jax.random.normal(k1, (2, 3, 64, 128), jnp.float32)
    gy2_ref, gx2_ref = gradient_xoy_ref(x2)
    gy2, gx2 = gradient_xoy(x2, ht=16)
    _check("tiled grad_y", gy2, gy2_ref)
    _check("tiled grad_x", gx2, gx2_ref)

    # 3) Ragged H (not a multiple of the tile, incl. the H % ht == 1 corner).
    xr = jax.random.normal(k2, (1, 2, 33, 128), jnp.float32)
    gyr_ref, gxr_ref = gradient_xoy_ref(xr)
    gyr, gxr = gradient_xoy(xr, ht=16)
    _check("ragged grad_y", gyr, gyr_ref)
    _check("ragged grad_x", gxr, gxr_ref)

    print("KERNEL_OK")
</pallas_src>

<mosaic_0001>
module attributes {stable_mosaic.version = 11 : i64} {
  func.func @_fused_kernel(%arg0: i32, %arg1: i32, %arg2: memref<1x16x16xf32, #tpu.memory_space<vmem>>, %arg3: memref<1x8x16xf32, #tpu.memory_space<vmem>>, %arg4: memref<1x16x16xf32, #tpu.memory_space<vmem>>, %arg5: memref<1x16x15xf32, #tpu.memory_space<vmem>>) attributes {dimension_semantics = [#tpu.dimension_semantics<parallel>, #tpu.dimension_semantics<arbitrary>], iteration_bounds = array<i64: 8, 1>, scalar_prefetch = 0 : i64, scratch_operands = 0 : i64, tpu.core_type = #tpu.core_type<tc>, window_params = [{transform_indices = @transform_0, window_bounds = array<i64: 1, 16, 16>}, {transform_indices = @transform_1, window_bounds = array<i64: 1, 8, 16>}, {transform_indices = @transform_2, window_bounds = array<i64: 1, 16, 16>}, {transform_indices = @transform_3, window_bounds = array<i64: 1, 16, 15>}]} {
    %c0 = arith.constant 0 : index
    %c0_0 = arith.constant 0 : index
    %c0_1 = arith.constant 0 : index
    %0 = vector.load %arg2[%c0, %c0_0, %c0_1] : memref<1x16x16xf32, #tpu.memory_space<vmem>>, vector<1x16x16xf32>
    %1 = vector.shape_cast %0 : vector<1x16x16xf32> to vector<16x16xf32>
    %2 = vector.extract_strided_slice %1 {offsets = [0, 1], sizes = [16, 15], strides = [1, 1]} : vector<16x16xf32> to vector<16x15xf32>
    %3 = vector.extract_strided_slice %1 {offsets = [0, 0], sizes = [16, 15], strides = [1, 1]} : vector<16x16xf32> to vector<16x15xf32>
    %4 = arith.subf %2, %3 : vector<16x15xf32>
    %c0_2 = arith.constant 0 : index
    %c0_3 = arith.constant 0 : index
    %c0_4 = arith.constant 0 : index
    %5 = vector.load %arg5[%c0_2, %c0_3, %c0_4] : memref<1x16x15xf32, #tpu.memory_space<vmem>>, vector<1x16x15xf32>
    %6 = vector.shape_cast %5 : vector<1x16x15xf32> to vector<16x15xf32>
    %7 = vector.shape_cast %4 : vector<16x15xf32> to vector<1x16x15xf32>
    tpu.vector_store %arg5[%c0_2, %c0_3, %c0_4], %7 {strides = array<i32>} : memref<1x16x15xf32, #tpu.memory_space<vmem>>, vector<1x16x15xf32>,
    %c16_i32 = arith.constant 16 : i32
    %8 = arith.muli %arg1, %c16_i32 : i32
    %c15_i32 = arith.constant 15 : i32
    %9 = arith.cmpi slt, %8, %c15_i32 : i32
    %10 = arith.extui %9 : i1 to i32
    %c0_i32 = arith.constant 0 : i32
    %11 = arith.cmpi ne, %10, %c0_i32 : i32
    scf.if %11 {
      %12 = vector.extract_strided_slice %1 {offsets = [1, 0], sizes = [15, 16], strides = [1, 1]} : vector<16x16xf32> to vector<15x16xf32>
      %13 = vector.extract_strided_slice %1 {offsets = [0, 0], sizes = [15, 16], strides = [1, 1]} : vector<16x16xf32> to vector<15x16xf32>
      %14 = arith.subf %12, %13 : vector<15x16xf32>
      %c0_5 = arith.constant 0 : index
      %c0_6 = arith.constant 0 : index
      %c0_7 = arith.constant 0 : index
      %15 = vector.load %arg4[%c0_5, %c0_6, %c0_7] : memref<1x16x16xf32, #tpu.memory_space<vmem>>, vector<1x15x16xf32>
      %16 = vector.shape_cast %15 : vector<1x15x16xf32> to vector<15x16xf32>
      %17 = vector.shape_cast %14 : vector<15x16xf32> to vector<1x15x16xf32>
      tpu.vector_store %arg4[%c0_5, %c0_6, %c0_7], %17 {strides = array<i32>} : memref<1x16x16xf32, #tpu.memory_space<vmem>>, vector<1x15x16xf32>,
      %c0_8 = arith.constant 0 : index
      %c0_9 = arith.constant 0 : index
      %c0_10 = arith.constant 0 : index
      %18 = vector.load %arg3[%c0_8, %c0_9, %c0_10] : memref<1x8x16xf32, #tpu.memory_space<vmem>>, vector<1x1x16xf32>
      %19 = vector.shape_cast %18 : vector<1x1x16xf32> to vector<1x16xf32>
      %20 = vector.extract_strided_slice %1 {offsets = [15, 0], sizes = [1, 16], strides = [1, 1]} : vector<16x16xf32> to vector<1x16xf32>
      %21 = arith.subf %19, %20 : vector<1x16xf32>
      %c0_11 = arith.constant 0 : index
      %c15 = arith.constant 15 : index
      %c0_12 = arith.constant 0 : index
      %22 = vector.load %arg4[%c0_11, %c15, %c0_12] : memref<1x16x16xf32, #tpu.memory_space<vmem>>, vector<1x1x16xf32>
      %23 = vector.shape_cast %22 : vector<1x1x16xf32> to vector<1x16xf32>
      %24 = vector.shape_cast %21 : vector<1x16xf32> to vector<1x1x16xf32>
      tpu.vector_store %arg4[%c0_11, %c15, %c0_12], %24 {strides = array<i32>} : memref<1x16x16xf32, #tpu.memory_space<vmem>>, vector<1x1x16xf32>,
    } else {
    }
    return
  }
  func.func @transform_0(%arg0: i32, %arg1: i32) -> (i32, i32, i32) {
    %c0_i32 = arith.constant 0 : i32
    %c0_i32_0 = arith.constant 0 : i32
    return %arg0, %arg1, %c0_i32 : i32, i32, i32
  }
  func.func @transform_1(%arg0: i32, %arg1: i32) -> (i32, i32, i32) {
    %c1_i32 = arith.constant 1 : i32
    %0 = arith.addi %arg1, %c1_i32 : i32
    %c2_i32 = arith.constant 2 : i32
    %1 = arith.muli %0, %c2_i32 : i32
    %c1_i32_0 = arith.constant 1 : i32
    %2 = arith.minsi %1, %c1_i32_0 : i32
    %c0_i32 = arith.constant 0 : i32
    %c0_i32_1 = arith.constant 0 : i32
    return %arg0, %2, %c0_i32 : i32, i32, i32
  }
  func.func @transform_2(%arg0: i32, %arg1: i32) -> (i32, i32, i32) {
    %c0_i32 = arith.constant 0 : i32
    %0 = arith.minsi %arg1, %c0_i32 : i32
    %c0_i32_0 = arith.constant 0 : i32
    %c0_i32_1 = arith.constant 0 : i32
    return %arg0, %0, %c0_i32_0 : i32, i32, i32
  }
  func.func @transform_3(%arg0: i32, %arg1: i32) -> (i32, i32, i32) {
    %c0_i32 = arith.constant 0 : i32
    %c0_i32_0 = arith.constant 0 : i32
    return %arg0, %arg1, %c0_i32 : i32, i32, i32
  }
}

</mosaic_0001>

<bundles_post_ra>
// kernel: tpu_custom_call.1
= control target key start
LH: loop header
LB: loop body
LE: loop exit
PB: predicated region body
PF: predicated region fallthrough
CT: control target
= control target key end

     0   :  { %9 = vsyncpa [#allocation3], 0  ;;  %s870_s0 = inlined_call_operand.hbm [shape: f32[8,16,16], index: 0, kind: input, shape index: {}]   ;;  %s871_s1 = inlined_call_operand.hbm [shape: f32[8,16,16], index: 1, kind: input, shape index: {}]   ;;  %s872_s2 = inlined_call_operand.vmem [shape: f32[8,15,16], index: 2, kind: output, shape index: {0}]   ;;  %s873_s3 = inlined_call_operand.vmem [shape: f32[8,16,15], index: 3, kind: output, shape index: {1}]  }
   0x1   :  { %11 = vsyncpa [#allocation3 + $0x1], 0 }
   0x2   :  { %12 = vsyncpa [#allocation5], 0 }
   0x3   :  { %14 = vsyncpa [#allocation5 + $0x1], 0  ;;  %s764_s12 = smov 0   ;;  %s766_s13 = smov 0  }
   0x4   :  { %s768_s14 = smov 0   ;;  %s770_s15 = smov 0  }
   0x5   :  { %s772_s16 = smov 0   ;;  %s774_s17 = smov 0  }
   0x6 LB: > { %s535_s18 = sadd.s32 4294967295, %s738_s17   ;;  %s32_s19 = sadd.s32 1, %s734_s16  ;;  %s738_s17 = sphi %s774_s17, %s20_s17   ;;  %s734_s16 = sphi %s772_s16, %s881_s16   ;;  %s730_s15 = sphi %s770_s15, %s880_s15   ;;  %s726_s14 = sphi %s768_s14, %s879_s14   ;;  %s722_s13 = sphi %s766_s13, %s878_s13   ;;  %s718_s12 = sphi %s764_s12, %s877_s12  }
   0x7   : > { %p34_p0 = scmp.ge.s32.totalorder %s32_s19, 8  ;;  %s41_s20 = sadd.s32 1, %s726_s14 }
   0x8   : > { %p48_p1 = scmp.ne.s32.totalorder %s726_s14, %s722_s13  ;;  %p49_p2 = scmp.eq.s32.totalorder %s738_s17, 0 }
   0x9   : > { %s883_s19 = smov (%p34_p0, %s32_s19), 0  ;;  %p54_p4 = scmp.ne.s32.totalorder %s722_s13, %s718_s12 }
   0xa   : > { %p800_p3 = por %p49_p2, %p48_p1  ;;  %s36_s22 = ssub.s32 %s734_s16, %s883_s19 }
   0xb   : > { %p55_p5 = scmp.eq.s32.totalorder %s535_s18, 0  ;;  %p39_p6 = scmp.eq.s32.totalorder %s36_s22, 0 }
   0xc   : > { %p571_p8 = scmp.lt.s32.totalorder %s738_s17, 8  ;;  %s174_s25 = sand.u32 1, %s726_s14  }
   0xd   : > { %p807_p7 = por %p55_p5, %p54_p4  ;;  %s554_s26 = sshll.u32 %s734_s16, 4 }
   0xe   : > { %s813_s24 = scalar_select %p39_p6, %s726_s14, %s41_s20  }
   0xf   : > { %s539_s27 = sshll.u32 %s174_s25, 4  ;;  %s185_s30 = scalar_lea.hbm %s870_s0, %s554_s26 }
  0x10   : > { %s186_s4 = sshll.u32 %s185_s30, 4  ;;  %s178_s5 = scalar_lea.vmem [#allocation2], %s539_s27  ;;  %s187_s4 = int_to_ptr.hbm [resolvable:$true] %s186_s4 }
  0x11   : > { %s188_s6 = sshll.u32 %s178_s5, 4  ;;  %p822_p9 = pnand %p571_p8, %p800_p3  ;;  %s189_s6 = int_to_ptr.vmem [resolvable:$true] %s188_s6 }
  0x12   : > { %p545_p10 = scmp.ge.s32.totalorder %s738_s17, 1  ;;  %p221_p11 = scmp.lt.s32.totalorder %s738_s17, 9 }
  0x13   : > { %s175_s8 = scalar_lea.sflag [#allocation3], %s174_s25  ;;  %s740_s9 = smov 128  }
  0x14   : > { %s741_s10 = smov 8   ;;  %p222_p12 = pnand %p545_p10, %p221_p11 }
  0x15   : > { %567 = dma.hbm_to_vmem [thread:$0]  (!%p822_p9), %s187_s4, 256, %s189_s6, %s175_s8, %s740_s9, %s740_s9, %s741_s10  }
  0x16   : > { %s542_s11 = sshll.u32 %s174_s25, 3  ;;  %s556_s12 = sadd.s32 8, %s554_s26 }
  0x17   : > { %s212_s21 = scalar_lea.hbm %s871_s1, %s556_s12  ;;  %s202_s27 = scalar_lea.vmem [#allocation4], %s542_s11 }
  0x18   : > { %s214_s22 = sshll.u32 %s212_s21, 4  ;;  %s216_s28 = sshll.u32 %s202_s27, 4  ;;  %s215_s22 = int_to_ptr.hbm [resolvable:$true] %s214_s22  ;;  %s217_s28 = int_to_ptr.vmem [resolvable:$true] %s216_s28 }
  0x19   : > { %s199_s29 = scalar_lea.sflag [#allocation5], %s174_s25  ;;  %225 = sbr.rel (%p222_p12) target bundleno = 276 (0x114), region = 28 }
  0x1a   : > { %570 = dma.hbm_to_vmem [thread:$0]  (!%p822_p9), %s215_s22, 128, %s217_s28, %s199_s29  }
  0x1b   : > { %s227_s30 = sand.u32 (!%p222_p12), 1, %s722_s13  }
  0x1c   : > { %s546_s4 = sshll.u32 (!%p222_p12), %s227_s30, 4  ;;  %s228_s5 = scalar_lea.sflag (!%p222_p12), [#allocation3], %s227_s30 }
  0x1d   : > { %s231_s6 = scalar_lea.vmem (!%p222_p12), [#allocation2], %s546_s4 }
  0x1e   : > { %709 = dma.done.wait (%p807_p7), %s228_s5, 256  }
  0x1f   : > { %711 = vsyncadd (%p807_p7), %s228_s5, 4294967040  ;;  %s547_s26 = sshll.u32 %s227_s30, 3  ;;  %s238_s8 = scalar_lea.sflag [#allocation5], %s227_s30 }
  0x20   : > { %s241_s9 = scalar_lea.vmem [#allocation4], %s547_s26 }
  0x21   : > { %713 = dma.done.wait (%p807_p7), %s238_s8, 128  }
  0x22   : > { %715 = vsyncadd (%p807_p7), %s238_s8, 4294967168  ;;  %v314_v0 = vld [vmem:[%s231_s6] sm:$0xff]  ;;  %s742_s25 = smov 1   ;;  %v315_v1 = vld [vmem:[%s231_s6 + $0x8] sm:$0xff]  ;;  %p293_p13 = scmp.lt.s32.totalorder %s730_s15, 7  ;;  %vm342_vm0 = vcmask 1040384  }
  0x23   : > { %318 = vrot.lane.b32.xlu0 %v314_v0, %s742_s25  ;;  %v343_v2 = vrot.slane %v314_v0, 7  ;;  %v344_v3 = vrot.slane %v315_v1, 7  ;;  %v354_v4 = vld [vmem:[%s241_s9] sm:$0x1]  ;;  %vm350_vm1 = vcmask 130049   ;;  %vm352_vm2 = vcmask 130048  }
  0x24   : > { %s885_s15 = smov (!%p293_p13, %s730_s15), 7  ;;  %vm357_vm3 = vcmask 122880   ;;  %s743_s12 = smov 127   ;;  %vm334_vm4 = vcmask 121856  }
  0x25   : > { %v345_v5 = vsel %vm342_vm0, %v343_v2, %v344_v3  ;;  %v356_v6 = vsub.f32 %v354_v4, %v344_v3  ;;  %s557_s7 = sshll.u32 %s885_s15, 4  ;;  %v348_v7 = vsub.f32 %v314_v0, %v343_v2 }
  0x26   : > { %s300_s11 = scalar_lea.vmem %s872_s2, %s557_s7  ;;  %v349_v8 = vsub.f32 %v315_v1, %v345_v5  ;;  %s312_s20 = scalar_lea.vmem %s873_s3, %s557_s7 }
  0x27   : > { %358 = vst.msk [vmem:[%s300_s11 + $0xf] sm:$0x1] %vm357_vm3, %v356_v6 }
  0x28   : > { %351 = vst.msk [vmem:[%s300_s11 - $0x1] sm:$0xfe] %vm350_vm1, %v348_v7 }
  0x29   : > { %353 = vst.msk [vmem:[%s300_s11 + $0x7] sm:$0xff] %vm352_vm2, %v349_v8 }
  0x2b   : > { %320 = vrot.lane.b32.xlu0 %v315_v1, %s742_s25 }
  0x95   : > { %v319_v9 = vpop.permute.xlu0 %318 }
  0x96   : > { %v324_v10 = vsub.f32 %v314_v0, %v319_v9 }
  0x98   : > { %328 = vrot.lane.b32.xlu1 %v324_v10, %s743_s12 }
  0x9d   : > { %v321_v11 = vpop.permute.xlu0 %320 }
  0x9e   : > { %v325_v12 = vsub.f32 %v315_v1, %v321_v11 }
  0xa0   : > { %330 = vrot.lane.b32.xlu1 %v325_v12, %s743_s12 }
 0x10a   : > { %v329_v13 = vpop.permute.xlu1 %328 }
 0x10b   : > { %335 = vst.msk [vmem:[%s312_s20] sm:$0xff] %vm334_vm4, %v329_v13 }
 0x112   : > { %v331_v14 = vpop.permute.xlu1 %330 }
 0x113   : > { %336 = vst.msk [vmem:[%s312_s20 + $0x8] sm:$0xff] %vm334_vm4, %v331_v14 }
 0x114 PF: > { %s20_s17 = sadd.s32 1, %s738_s17   ;;  %s877_s12 = smov %s722_s13 }
 0x115   : > { %p17_p0 = scmp.ge.s32.totalorder %s20_s17, 10   ;;  %s878_s13 = smov %s726_s14 }
 0x116   : > { %s879_s14 = smov %s813_s24  ;;  %s880_s15 = smov %s734_s16 }
 0x117   : > { %s881_s16 = smov %s883_s19  ;;  %19 = sbr.rel (!%p17_p0) target bundleno = 6 (0x6), region = 97 }
 0x11c   :  { %420 = vsyncpa [#allocation3], 1 }
 0x11d   :  { %422 = vsyncpa [#allocation3 + $0x1], 1 }
 0x11e   :  { %423 = vsyncpa [#allocation5], 1 }
 0x11f   :  { %425 = vsyncpa [#allocation5 + $0x1], 1 }

</bundles_post_ra>
